<compile_context>
chip_gen: v5e
topology: v5e:2x2
jax: 0.10.0
libtpu: 0.0.40
codegen_flags: <defaults>
</compile_context>

<pallas_src>
import jax
import jax.numpy as jnp
from jax.experimental import pallas as pl
from jax.experimental.pallas import tpu as pltpu


# ----------------------------- model config ---------------------------------
NUM_HEADS = 4
D_IN = 32
D_OUT = 32
D_HEAD = D_OUT // NUM_HEADS
CONTEXT_LEN = 8          # num_tokens == context_length for this example
BATCH = 2
D_PAD = 128              # lane-dense padded width for the output projection


# ------------------------------- kernel -------------------------------------
def mha_kernel(x_ref, wqkv_ref, wo_ref, bo_ref, mask_ref, out_ref):
    # x_ref:    (B*T, d_in)       flattened tokens
    # wqkv_ref: (d_in, 3*d_out)   [Wq * scale | Wk | Wv]
    # wo_ref:   (d_out, D_PAD)    output projection, zero-padded to 128 lanes
    # bo_ref:   (1, D_PAD)        output bias, zero-padded
    # mask_ref: (T, T)            additive causal bias (0 on/below diag, -1e30 above)
    # out_ref:  (B*T, D_PAD)
    BT = x_ref.shape[0]
    T = mask_ref.shape[0]
    B = BT // T
    d_out = wo_ref.shape[0]
    d_pad = out_ref.shape[1]

    # Fused QKV projection: single MXU push with N = 3*d_out.
    qkv = jnp.dot(x_ref[...], wqkv_ref[...],
                  preferred_element_type=jnp.float32)            # (B*T, 3*d_out)
    qkv = qkv.reshape(B, T, 3 * d_out)                           # leading-dim split

    # Hoist the mask broadcast out of the head loop.
    mask = jnp.broadcast_to(mask_ref[...], (B, T, T))            # (B, T, T)

    acc = jnp.zeros((BT, d_pad), jnp.float32)

    for h in range(NUM_HEADS):                                   # static, unrolled
        lo = h * D_HEAD
        qh = qkv[:, :, lo:lo + D_HEAD]                           # (B, T, d_head)
        kh = qkv[:, :, d_out + lo:d_out + lo + D_HEAD]
        vh = qkv[:, :, 2 * d_out + lo:2 * d_out + lo + D_HEAD]

        # Batched scores over B; contract last dims (no explicit transpose).
        s = jnp.einsum('bqd,bkd->bqk', qh, kh,
                       preferred_element_type=jnp.float32) + mask    # (B, T, T)

        m = jnp.max(s, axis=-1, keepdims=True)
        e = jnp.exp(s - m)
        p = e * pl.reciprocal(jnp.sum(e, axis=-1, keepdims=True),
                              approx=False)                          # softmax

        ctx = jnp.einsum('bqk,bkd->bqd', p, vh,
                         preferred_element_type=jnp.float32)         # (B, T, d_head)

        # Fold this head's output straight into the output projection.
        # Rows lo:lo+d_head of Wo are a sublane-aligned slice (cheap).
        acc = acc + jnp.dot(ctx.reshape(BT, D_HEAD),
                            wo_ref[lo:lo + D_HEAD, :],
                            preferred_element_type=jnp.float32)      # (B*T, D_PAD)

    # Lane-dense (128-wide) unmasked store.
    out_ref[...] = (acc + bo_ref[...]).astype(out_ref.dtype)


# ------------------------------- wrapper -------------------------------------
@jax.jit
def multi_head_attention(x, wq, wk, wv, wo, bo):
    B, T, d_in = x.shape
    d_out = wq.shape[1]
    scale = 1.0 / (D_HEAD ** 0.5)

    # Fuse QKV weights; fold the attention scale into Wq.
    wqkv = jnp.concatenate([wq * scale, wk, wv], axis=1)             # (d_in, 3*d_out)

    # Pad the output projection to a lane-dense width (multiple of 128).
    wo_p = jnp.pad(wo, ((0, 0), (0, D_PAD - d_out)))                 # (d_out, 128)
    bo_p = jnp.pad(bo, (0, D_PAD - d_out)).reshape(1, D_PAD)         # (1, 128)

    # Precomputed additive causal mask bias (finite, avoids inf-inf edge cases).
    causal = jnp.triu(jnp.ones((T, T), dtype=bool), k=1)
    mask_bias = jnp.where(causal, jnp.float32(-1e30), jnp.float32(0.0))

    xf = x.reshape(B * T, d_in)

    out = pl.pallas_call(
        mha_kernel,
        out_shape=jax.ShapeDtypeStruct((B * T, D_PAD), jnp.float32),
        compiler_params=pltpu.CompilerParams(
            vmem_limit_bytes=32 * 1024 * 1024),   # fits v7x's smaller VMEM too
    )(xf, wqkv, wo_p, bo_p, mask_bias)

    return out[:, :d_out].reshape(B, T, d_out).astype(x.dtype)


# --------------------------- pure-JAX reference -------------------------------
def reference_mha(x, wq, wk, wv, wo, bo):
    B, T, _ = x.shape

    def split_heads(t):
        return t.reshape(B, T, NUM_HEADS, D_HEAD).transpose(0, 2, 1, 3)

    q = split_heads(x @ wq)
    k = split_heads(x @ wk)
    v = split_heads(x @ wv)
    scores = jnp.einsum("bhqd,bhkd->bhqk", q, k)
    mask = jnp.triu(jnp.ones((T, T), bool), k=1)
    scores = jnp.where(mask[None, None], -jnp.inf, scores)
    att = jax.nn.softmax(scores / (D_HEAD ** 0.5), axis=-1)
    ctx = jnp.einsum("bhqk,bhkd->bhqd", att, v)
    ctx = ctx.transpose(0, 2, 1, 3).reshape(B, T, D_OUT)
    return ctx @ wo + bo


# --------------------------------- main ---------------------------------------
if __name__ == "__main__":
    key = jax.random.PRNGKey(0)
    kx, kq, kk, kv, ko, kb = jax.random.split(key, 6)

    x = jax.random.normal(kx, (BATCH, CONTEXT_LEN, D_IN), jnp.float32)

    # Parameters stored transposed as (in, out); qkv_bias=False, out_proj has bias.
    wq = jax.random.normal(kq, (D_IN, D_OUT), jnp.float32) * 0.1
    wk = jax.random.normal(kk, (D_IN, D_OUT), jnp.float32) * 0.1
    wv = jax.random.normal(kv, (D_IN, D_OUT), jnp.float32) * 0.1
    wo = jax.random.normal(ko, (D_OUT, D_OUT), jnp.float32) * 0.1
    bo = jax.random.normal(kb, (D_OUT,), jnp.float32) * 0.1

    out = multi_head_attention(x, wq, wk, wv, wo, bo)
    out = jax.block_until_ready(out)

    ref = reference_mha(x, wq, wk, wv, wo, bo)
    assert out.shape == (BATCH, CONTEXT_LEN, D_OUT)
    assert jnp.allclose(out, ref, atol=1e-4, rtol=1e-4), "mismatch vs reference"

    print("KERNEL_OK")
</pallas_src>

<mosaic_0001>
module attributes {stable_mosaic.version = 11 : i64} {
  func.func @mha_kernel(%arg0: memref<16x32xf32, #tpu.memory_space<vmem>>, %arg1: memref<32x96xf32, #tpu.memory_space<vmem>>, %arg2: memref<32x128xf32, #tpu.memory_space<vmem>>, %arg3: memref<1x128xf32, #tpu.memory_space<vmem>>, %arg4: memref<8x8xf32, #tpu.memory_space<vmem>>, %arg5: memref<16x128xf32, #tpu.memory_space<vmem>>) attributes {dimension_semantics = [], scalar_prefetch = 0 : i64, scratch_operands = 0 : i64, tpu.core_type = #tpu.core_type<tc>} {
    %c0 = arith.constant 0 : index
    %c0_0 = arith.constant 0 : index
    %0 = vector.load %arg0[%c0, %c0_0] : memref<16x32xf32, #tpu.memory_space<vmem>>, vector<16x32xf32>
    %c0_1 = arith.constant 0 : index
    %c0_2 = arith.constant 0 : index
    %1 = vector.load %arg1[%c0_1, %c0_2] : memref<32x96xf32, #tpu.memory_space<vmem>>, vector<32x96xf32>
    %cst = arith.constant dense<0.000000e+00> : vector<16x96xf32>
    %2 = tpu.matmul %0, %1, %cst {dimension_numbers = #tpu.dot_dimension_numbers<[1], [0], [0], [1], [0, 0, 1, 1], [], []>} : vector<16x32xf32>, vector<32x96xf32>, vector<16x96xf32> -> vector<16x96xf32>
    %3 = vector.shape_cast %2 : vector<16x96xf32> to vector<2x8x96xf32>
    %c0_3 = arith.constant 0 : index
    %c0_4 = arith.constant 0 : index
    %4 = vector.load %arg4[%c0_3, %c0_4] : memref<8x8xf32, #tpu.memory_space<vmem>>, vector<8x8xf32>
    %5 = vector.shape_cast %4 : vector<8x8xf32> to vector<1x8x8xf32>
    %6 = vector.broadcast %5 : vector<1x8x8xf32> to vector<2x8x8xf32>
    %cst_5 = arith.constant 0.000000e+00 : f32
    %7 = vector.broadcast %cst_5 : f32 to vector<16x128xf32>
    %8 = vector.extract_strided_slice %3 {offsets = [0, 0, 0], sizes = [2, 8, 8], strides = [1, 1, 1]} : vector<2x8x96xf32> to vector<2x8x8xf32>
    %9 = vector.extract_strided_slice %3 {offsets = [0, 0, 32], sizes = [2, 8, 8], strides = [1, 1, 1]} : vector<2x8x96xf32> to vector<2x8x8xf32>
    %10 = vector.extract_strided_slice %3 {offsets = [0, 0, 64], sizes = [2, 8, 8], strides = [1, 1, 1]} : vector<2x8x96xf32> to vector<2x8x8xf32>
    "tpu.trace_start"() <{level = 10 : i32, message = "bqd,bkd->bqk"}> : () -> ()
    %cst_6 = arith.constant dense<0.000000e+00> : vector<2x8x8xf32>
    %11 = tpu.matmul %8, %9, %cst_6 {dimension_numbers = #tpu.dot_dimension_numbers<[2], [2], [1], [1], [0, 0, 0, 1, 1, 1], [0], [0]>} : vector<2x8x8xf32>, vector<2x8x8xf32>, vector<2x8x8xf32> -> vector<2x8x8xf32>
    "tpu.trace_stop"() : () -> ()
    %12 = arith.addf %11, %6 : vector<2x8x8xf32>
    %cst_7 = arith.constant dense<0xFF800000> : vector<2x8xf32>
    %13 = vector.multi_reduction <maximumf>, %12, %cst_7 [2] : vector<2x8x8xf32> to vector<2x8xf32>
    %14 = vector.shape_cast %13 : vector<2x8xf32> to vector<2x8x1xf32>
    %15 = vector.broadcast %14 : vector<2x8x1xf32> to vector<2x8x8xf32>
    %16 = arith.subf %12, %15 : vector<2x8x8xf32>
    %17 = math.exp %16 : vector<2x8x8xf32>
    %cst_8 = arith.constant dense<0.000000e+00> : vector<2x8xf32>
    %18 = vector.multi_reduction <add>, %17, %cst_8 [2] : vector<2x8x8xf32> to vector<2x8xf32>
    %19 = vector.shape_cast %18 : vector<2x8xf32> to vector<2x8x1xf32>
    %20 = tpu.reciprocal %19 : vector<2x8x1xf32> -> vector<2x8x1xf32>
    %21 = vector.broadcast %20 : vector<2x8x1xf32> to vector<2x8x8xf32>
    %22 = arith.mulf %17, %21 : vector<2x8x8xf32>
    "tpu.trace_start"() <{level = 10 : i32, message = "bqk,bkd->bqd"}> : () -> ()
    %cst_9 = arith.constant dense<0.000000e+00> : vector<2x8x8xf32>
    %23 = tpu.matmul %22, %10, %cst_9 {dimension_numbers = #tpu.dot_dimension_numbers<[2], [1], [1], [2], [0, 0, 0, 1, 1, 2], [0], [0]>} : vector<2x8x8xf32>, vector<2x8x8xf32>, vector<2x8x8xf32> -> vector<2x8x8xf32>
    "tpu.trace_stop"() : () -> ()
    %24 = vector.shape_cast %23 : vector<2x8x8xf32> to vector<16x8xf32>
    %c0_10 = arith.constant 0 : index
    %c0_11 = arith.constant 0 : index
    %25 = vector.load %arg2[%c0_10, %c0_11] : memref<32x128xf32, #tpu.memory_space<vmem>>, vector<8x128xf32>
    %cst_12 = arith.constant dense<0.000000e+00> : vector<16x128xf32>
    %26 = tpu.matmul %24, %25, %cst_12 {dimension_numbers = #tpu.dot_dimension_numbers<[1], [0], [0], [1], [0, 0, 1, 1], [], []>} : vector<16x8xf32>, vector<8x128xf32>, vector<16x128xf32> -> vector<16x128xf32>
    %27 = arith.addf %7, %26 : vector<16x128xf32>
    %28 = vector.extract_strided_slice %3 {offsets = [0, 0, 8], sizes = [2, 8, 8], strides = [1, 1, 1]} : vector<2x8x96xf32> to vector<2x8x8xf32>
    %29 = vector.extract_strided_slice %3 {offsets = [0, 0, 40], sizes = [2, 8, 8], strides = [1, 1, 1]} : vector<2x8x96xf32> to vector<2x8x8xf32>
    %30 = vector.extract_strided_slice %3 {offsets = [0, 0, 72], sizes = [2, 8, 8], strides = [1, 1, 1]} : vector<2x8x96xf32> to vector<2x8x8xf32>
    "tpu.trace_start"() <{level = 10 : i32, message = "bqd,bkd->bqk"}> : () -> ()
    %cst_13 = arith.constant dense<0.000000e+00> : vector<2x8x8xf32>
    %31 = tpu.matmul %28, %29, %cst_13 {dimension_numbers = #tpu.dot_dimension_numbers<[2], [2], [1], [1], [0, 0, 0, 1, 1, 1], [0], [0]>} : vector<2x8x8xf32>, vector<2x8x8xf32>, vector<2x8x8xf32> -> vector<2x8x8xf32>
    "tpu.trace_stop"() : () -> ()
    %32 = arith.addf %31, %6 : vector<2x8x8xf32>
    %cst_14 = arith.constant dense<0xFF800000> : vector<2x8xf32>
    %33 = vector.multi_reduction <maximumf>, %32, %cst_14 [2] : vector<2x8x8xf32> to vector<2x8xf32>
    %34 = vector.shape_cast %33 : vector<2x8xf32> to vector<2x8x1xf32>
    %35 = vector.broadcast %34 : vector<2x8x1xf32> to vector<2x8x8xf32>
    %36 = arith.subf %32, %35 : vector<2x8x8xf32>
    %37 = math.exp %36 : vector<2x8x8xf32>
    %cst_15 = arith.constant dense<0.000000e+00> : vector<2x8xf32>
    %38 = vector.multi_reduction <add>, %37, %cst_15 [2] : vector<2x8x8xf32> to vector<2x8xf32>
    %39 = vector.shape_cast %38 : vector<2x8xf32> to vector<2x8x1xf32>
    %40 = tpu.reciprocal %39 : vector<2x8x1xf32> -> vector<2x8x1xf32>
    %41 = vector.broadcast %40 : vector<2x8x1xf32> to vector<2x8x8xf32>
    %42 = arith.mulf %37, %41 : vector<2x8x8xf32>
    "tpu.trace_start"() <{level = 10 : i32, message = "bqk,bkd->bqd"}> : () -> ()
    %cst_16 = arith.constant dense<0.000000e+00> : vector<2x8x8xf32>
    %43 = tpu.matmul %42, %30, %cst_16 {dimension_numbers = #tpu.dot_dimension_numbers<[2], [1], [1], [2], [0, 0, 0, 1, 1, 2], [0], [0]>} : vector<2x8x8xf32>, vector<2x8x8xf32>, vector<2x8x8xf32> -> vector<2x8x8xf32>
    "tpu.trace_stop"() : () -> ()
    %44 = vector.shape_cast %43 : vector<2x8x8xf32> to vector<16x8xf32>
    %c8 = arith.constant 8 : index
    %c0_17 = arith.constant 0 : index
    %45 = vector.load %arg2[%c8, %c0_17] : memref<32x128xf32, #tpu.memory_space<vmem>>, vector<8x128xf32>
    %cst_18 = arith.constant dense<0.000000e+00> : vector<16x128xf32>
    %46 = tpu.matmul %44, %45, %cst_18 {dimension_numbers = #tpu.dot_dimension_numbers<[1], [0], [0], [1], [0, 0, 1, 1], [], []>} : vector<16x8xf32>, vector<8x128xf32>, vector<16x128xf32> -> vector<16x128xf32>
    %47 = arith.addf %27, %46 : vector<16x128xf32>
    %48 = vector.extract_strided_slice %3 {offsets = [0, 0, 16], sizes = [2, 8, 8], strides = [1, 1, 1]} : vector<2x8x96xf32> to vector<2x8x8xf32>
    %49 = vector.extract_strided_slice %3 {offsets = [0, 0, 48], sizes = [2, 8, 8], strides = [1, 1, 1]} : vector<2x8x96xf32> to vector<2x8x8xf32>
    %50 = vector.extract_strided_slice %3 {offsets = [0, 0, 80], sizes = [2, 8, 8], strides = [1, 1, 1]} : vector<2x8x96xf32> to vector<2x8x8xf32>
    "tpu.trace_start"() <{level = 10 : i32, message = "bqd,bkd->bqk"}> : () -> ()
    %cst_19 = arith.constant dense<0.000000e+00> : vector<2x8x8xf32>
    %51 = tpu.matmul %48, %49, %cst_19 {dimension_numbers = #tpu.dot_dimension_numbers<[2], [2], [1], [1], [0, 0, 0, 1, 1, 1], [0], [0]>} : vector<2x8x8xf32>, vector<2x8x8xf32>, vector<2x8x8xf32> -> vector<2x8x8xf32>
    "tpu.trace_stop"() : () -> ()
    %52 = arith.addf %51, %6 : vector<2x8x8xf32>
    %cst_20 = arith.constant dense<0xFF800000> : vector<2x8xf32>
    %53 = vector.multi_reduction <maximumf>, %52, %cst_20 [2] : vector<2x8x8xf32> to vector<2x8xf32>
    %54 = vector.shape_cast %53 : vector<2x8xf32> to vector<2x8x1xf32>
    %55 = vector.broadcast %54 : vector<2x8x1xf32> to vector<2x8x8xf32>
    %56 = arith.subf %52, %55 : vector<2x8x8xf32>
    %57 = math.exp %56 : vector<2x8x8xf32>
    %cst_21 = arith.constant dense<0.000000e+00> : vector<2x8xf32>
    %58 = vector.multi_reduction <add>, %57, %cst_21 [2] : vector<2x8x8xf32> to vector<2x8xf32>
    %59 = vector.shape_cast %58 : vector<2x8xf32> to vector<2x8x1xf32>
    %60 = tpu.reciprocal %59 : vector<2x8x1xf32> -> vector<2x8x1xf32>
    %61 = vector.broadcast %60 : vector<2x8x1xf32> to vector<2x8x8xf32>
    %62 = arith.mulf %57, %61 : vector<2x8x8xf32>
    "tpu.trace_start"() <{level = 10 : i32, message = "bqk,bkd->bqd"}> : () -> ()
    %cst_22 = arith.constant dense<0.000000e+00> : vector<2x8x8xf32>
    %63 = tpu.matmul %62, %50, %cst_22 {dimension_numbers = #tpu.dot_dimension_numbers<[2], [1], [1], [2], [0, 0, 0, 1, 1, 2], [0], [0]>} : vector<2x8x8xf32>, vector<2x8x8xf32>, vector<2x8x8xf32> -> vector<2x8x8xf32>
    "tpu.trace_stop"() : () -> ()
    %64 = vector.shape_cast %63 : vector<2x8x8xf32> to vector<16x8xf32>
    %c16 = arith.constant 16 : index
    %c0_23 = arith.constant 0 : index
    %65 = vector.load %arg2[%c16, %c0_23] : memref<32x128xf32, #tpu.memory_space<vmem>>, vector<8x128xf32>
    %cst_24 = arith.constant dense<0.000000e+00> : vector<16x128xf32>
    %66 = tpu.matmul %64, %65, %cst_24 {dimension_numbers = #tpu.dot_dimension_numbers<[1], [0], [0], [1], [0, 0, 1, 1], [], []>} : vector<16x8xf32>, vector<8x128xf32>, vector<16x128xf32> -> vector<16x128xf32>
    %67 = arith.addf %47, %66 : vector<16x128xf32>
    %68 = vector.extract_strided_slice %3 {offsets = [0, 0, 24], sizes = [2, 8, 8], strides = [1, 1, 1]} : vector<2x8x96xf32> to vector<2x8x8xf32>
    %69 = vector.extract_strided_slice %3 {offsets = [0, 0, 56], sizes = [2, 8, 8], strides = [1, 1, 1]} : vector<2x8x96xf32> to vector<2x8x8xf32>
    %70 = vector.extract_strided_slice %3 {offsets = [0, 0, 88], sizes = [2, 8, 8], strides = [1, 1, 1]} : vector<2x8x96xf32> to vector<2x8x8xf32>
    "tpu.trace_start"() <{level = 10 : i32, message = "bqd,bkd->bqk"}> : () -> ()
    %cst_25 = arith.constant dense<0.000000e+00> : vector<2x8x8xf32>
    %71 = tpu.matmul %68, %69, %cst_25 {dimension_numbers = #tpu.dot_dimension_numbers<[2], [2], [1], [1], [0, 0, 0, 1, 1, 1], [0], [0]>} : vector<2x8x8xf32>, vector<2x8x8xf32>, vector<2x8x8xf32> -> vector<2x8x8xf32>
    "tpu.trace_stop"() : () -> ()
    %72 = arith.addf %71, %6 : vector<2x8x8xf32>
    %cst_26 = arith.constant dense<0xFF800000> : vector<2x8xf32>
    %73 = vector.multi_reduction <maximumf>, %72, %cst_26 [2] : vector<2x8x8xf32> to vector<2x8xf32>
    %74 = vector.shape_cast %73 : vector<2x8xf32> to vector<2x8x1xf32>
    %75 = vector.broadcast %74 : vector<2x8x1xf32> to vector<2x8x8xf32>
    %76 = arith.subf %72, %75 : vector<2x8x8xf32>
    %77 = math.exp %76 : vector<2x8x8xf32>
    %cst_27 = arith.constant dense<0.000000e+00> : vector<2x8xf32>
    %78 = vector.multi_reduction <add>, %77, %cst_27 [2] : vector<2x8x8xf32> to vector<2x8xf32>
    %79 = vector.shape_cast %78 : vector<2x8xf32> to vector<2x8x1xf32>
    %80 = tpu.reciprocal %79 : vector<2x8x1xf32> -> vector<2x8x1xf32>
    %81 = vector.broadcast %80 : vector<2x8x1xf32> to vector<2x8x8xf32>
    %82 = arith.mulf %77, %81 : vector<2x8x8xf32>
    "tpu.trace_start"() <{level = 10 : i32, message = "bqk,bkd->bqd"}> : () -> ()
    %cst_28 = arith.constant dense<0.000000e+00> : vector<2x8x8xf32>
    %83 = tpu.matmul %82, %70, %cst_28 {dimension_numbers = #tpu.dot_dimension_numbers<[2], [1], [1], [2], [0, 0, 0, 1, 1, 2], [0], [0]>} : vector<2x8x8xf32>, vector<2x8x8xf32>, vector<2x8x8xf32> -> vector<2x8x8xf32>
    "tpu.trace_stop"() : () -> ()
    %84 = vector.shape_cast %83 : vector<2x8x8xf32> to vector<16x8xf32>
    %c24 = arith.constant 24 : index
    %c0_29 = arith.constant 0 : index
    %85 = vector.load %arg2[%c24, %c0_29] : memref<32x128xf32, #tpu.memory_space<vmem>>, vector<8x128xf32>
    %cst_30 = arith.constant dense<0.000000e+00> : vector<16x128xf32>
    %86 = tpu.matmul %84, %85, %cst_30 {dimension_numbers = #tpu.dot_dimension_numbers<[1], [0], [0], [1], [0, 0, 1, 1], [], []>} : vector<16x8xf32>, vector<8x128xf32>, vector<16x128xf32> -> vector<16x128xf32>
    %87 = arith.addf %67, %86 : vector<16x128xf32>
    %c0_31 = arith.constant 0 : index
    %c0_32 = arith.constant 0 : index
    %88 = vector.load %arg3[%c0_31, %c0_32] : memref<1x128xf32, #tpu.memory_space<vmem>>, vector<1x128xf32>
    %89 = vector.broadcast %88 : vector<1x128xf32> to vector<16x128xf32>
    %90 = arith.addf %87, %89 : vector<16x128xf32>
    %c0_33 = arith.constant 0 : index
    %c0_34 = arith.constant 0 : index
    %91 = vector.load %arg5[%c0_33, %c0_34] : memref<16x128xf32, #tpu.memory_space<vmem>>, vector<16x128xf32>
    tpu.vector_store %arg5[%c0_33, %c0_34], %90 {strides = array<i32>} : memref<16x128xf32, #tpu.memory_space<vmem>>, vector<16x128xf32>,
    return
  }
}

</mosaic_0001>

<bundles_post_ra>
// kernel: multi_head_attention.1
= control target key start
LH: loop header
LB: loop body
LE: loop exit
PB: predicated region body
PF: predicated region fallthrough
CT: control target
= control target key end

     0   :  { %vm26_vm0 = vcmask 261120   ;;  %s894_s28 = smov 64   ;;  %s895_s29 = smov 96   ;;  %vm60_vm1 = vcmask 64512   ;;  %s1085_s1 = inlined_call_operand.vmem [shape: f32[32,96], index: 1, kind: input, shape index: {}]   ;;  %s1086_s0 = inlined_call_operand.vmem [shape: f32[16,32], index: 0, kind: input, shape index: {}]   ;;  %s1087_s4 = inlined_call_operand.vmem [shape: f32[8,8], index: 4, kind: input, shape index: {}]   ;;  %s1088_s2 = inlined_call_operand.vmem [shape: f32[32,128], index: 2, kind: input, shape index: {}]   ;;  %s1089_s3 = inlined_call_operand.vmem [shape: f32[1,128], index: 3, kind: input, shape index: {}]   ;;  %s1090_s5 = inlined_call_operand.vmem [shape: f32[16,128], index: 5, kind: output, shape index: {}]  }
   0x1   :  { %v25_v0 = vld [vmem:[%s1085_s1 + $0x18] sm:$0xff]  ;;  %v24_v1 = vld [vmem:[%s1085_s1 + $0x10] sm:$0xff]  ;;  %v23_v2 = vld [vmem:[%s1085_s1 + $0x8] sm:$0xff]  ;;  %s896_s30 = smov 88   ;;  %s898_s10 = smov 80  }
   0x2   :  { %45 = vmatpush.msra.mxu0 %v25_v0  ;;  %v22_v3 = vld [vmem:[%s1085_s1] sm:$0xff]  ;;  %s897_s1 = smov 120   ;;  %v21_v9 = vld [vmem:[%s1086_s0 + $0x8] sm:$0xff]  ;;  %s899_s11 = smov 56  }
   0x3   :  { %v20_v4 = vld [vmem:[%s1086_s0] sm:$0xff]  ;;  %s900_s12 = smov 112   ;;  %s901_s15 = smov 72  }
   0x4   :  { %46 = vmatpush.msra.mxu0 %v24_v1  ;;  %v971_v10 = vld [vmem:[%s1087_s4] sm:$0xff]  ;;  %s902_s16 = smov 104   ;;  %s903_s17 = smov 48  }
   0x5   :  { %v212_v34 = vld [vmem:[%s1088_s2] sm:$0xff]  ;;  %s904_s20 = smov 40  }
   0x6   :  { %47 = vmatpush.msra.mxu0 %v23_v2 }
   0x8   :  { %48 = vmatpush.msra.mxu0 %v22_v3 }
   0x9   :  { %816 = vmatmul.msk.f32.vlgmr.msra.gmra.mxu0 %vm26_vm0, %v20_v4 }
   0xa   :  { %420 = vmatpush.msrb.mxu0 %v212_v34 }
  0x11   :  { %817 = vmatmul.msk.f32.gmra.mxu0 %vm26_vm0, %v21_v9 }
  0x86   :  { %v951_v5 = vpop.f32.mrf.mxu0 }
  0x87   :  { %160 = vrot.lane.b32.xlu2 %v951_v5, %s894_s28  ;;  %58 = vrot.lane.b32.xlu0 %v951_v5, %s895_s29 }
  0x8e   :  { %v976_v19 = vpop.f32.mrf.mxu0 }
  0x8f   :  { %215 = vrot.lane.b32.xlu2 %v951_v5, %s896_s30 }
  0x97   :  { %213 = vrot.lane.b32.xlu2 %v951_v5, %s897_s1 }
  0xe1   :  { %v161_v6 = vpop.permute.xlu2 %160 }
  0xe9   :  { %v216_v8 = vpop.permute.xlu2 %215 }
  0xf1   :  { %v214_v33 = vpop.permute.xlu2 %213 }
  0xf9   :  { %v59_v7 = vpop.permute.xlu0 %58 }
  0xfa   :  { %818 = vmatpush.xpose.msk.msra.mxu1 %vm60_vm1, %v59_v7 }
  0xfd   :  { %819 = vmatmul.msk.f32.vlgmr.msra.gmra.mxu1 %vm60_vm1, %v951_v5 }
  0xfe   :  { %181 = vmatpush.msrb.mxu1 %v161_v6 }
 0x100   :  { %824 = vmatpush.xpose.msk.msra.mxu1 %vm60_vm1, %v216_v8 }
 0x17a   :  { %v82_v11 = vpop.f32.mrf.mxu1 }
 0x17b   :  { %v83_v12 = vadd.f32 %v82_v11, %v971_v10 }
 0x17d   :  { %v112_v13 = vsel %vm60_vm1, %v83_v12, -inf }
 0x17e   :  { %113 = vmax.xlane.f32.xlu0 %v112_v13 }
 0x1f1   :  { %v114_v14 = vpop.xlane.xlu0 %113 }
 0x1f2   :  { %v118_v15 = vsub.f32 %v83_v12, %v114_v14 }
 0x1f4   :  { %v120_v16 = vmul.f32 1.442695, %v118_v15 }
 0x1f6   :  { %862 = vpow2.f32 %v120_v16 }
 0x1fc   :  { %v863_v17 = vpop.eup %862 }
 0x1fd   :  { %v124_v18 = vsel %vm60_vm1, %v863_v17, 0.0 }
 0x1fe   :  { %125 = vadd.xlane.f32.xlu1 %v124_v18 }
 0x217   :  { %86 = vrot.lane.b32.xlu1 %v976_v19, %s895_s29 }
 0x271   :  { %v126_v20 = vpop.xlane.xlu1 %125 }
 0x272   :  { %864 = vrcp.f32 %v126_v20  ;;  %v141_v24 = vand.u32 2147483648, %v126_v20  ;;  %v139_v26 = vand.u32 2147483647, %v126_v20  ;;  %vm135_vm3 = vweird.f32 %v126_v20 }
 0x274   :  { %v142_v28 = vor.u32 1.1754944e-38, %v141_v24  ;;  %vm140_vm5 = vcmp.eq.f32.partialorder %v139_v26, 8.507059e+37 }
 0x278   :  { %v865_v21 = vpop.eup %864 }
 0x279   :  { %v131_v22 = vmul.f32 %v865_v21, %v126_v20  ;;  %vm136_vm2 = vweird.f32 %v865_v21 }
 0x27a   :  { %vm137_vm4 = vmor %vm135_vm3, %vm136_vm2 }
 0x27b   :  { %v132_v23 = vsub.f32 1.0, %v131_v22 }
 0x27d   :  { %v133_v25 = vmul.f32 %v865_v21, %v132_v23 }
 0x27f   :  { %v134_v27 = vadd.f32 %v865_v21, %v133_v25  ;;  %v369_v25 = vld [vmem:[%s1088_s2 + $0x8] sm:$0xff] }
 0x281   :  { %v138_v29 = vsel %vm137_vm4, %v865_v21, %v134_v27 }
 0x282   :  { %v143_v30 = vsel %vm140_vm5, %v142_v28, %v138_v29 }
 0x283   :  { %v158_v31 = vmul.f32 %v863_v17, %v143_v30 }
 0x285   :  { %822 = vmatmul.msk.f32.vlgmr.msrb.gmra.mxu1 %vm60_vm1, %v158_v31 }
 0x289   :  { %v87_v32 = vpop.permute.xlu1 %86 }
 0x28a   :  { %820 = vmatpush.xpose.msk.msra.mxu2 %vm60_vm1, %v87_v32 }
 0x28d   :  { %821 = vmatmul.msk.f32.vlgmr.msra.gmra.mxu2 %vm60_vm1, %v976_v19  ;;  %825 = vmatmul.msk.f32.vlgmr.msra.gmra.mxu1 %vm60_vm1, %v214_v33 }
 0x302   :  { %v183_v35 = vpop.f32.mrf.mxu1 }
 0x303   :  { %832 = vmatmul.msk.f32.vlgmr.msrb.gmra.mxu0 %vm60_vm1, %v183_v35 }
 0x30a   :  { %v238_v36 = vpop.f32.mrf.mxu1 }
 0x30b   :  { %v239_v37 = vadd.f32 %v238_v36, %v971_v10 }
 0x30d   :  { %v269_v38 = vsel %vm60_vm1, %v239_v37, -inf }
 0x30e   :  { %270 = vmax.xlane.f32.xlu1 %v269_v38 }
 0x310   :  { %v109_v39 = vpop.f32.mrf.mxu2 }
 0x311   :  { %v110_v40 = vadd.f32 %v109_v39, %v971_v10 }
 0x313   :  { %v115_v41 = vsel %vm60_vm1, %v110_v40, -inf }
 0x314   :  { %116 = vmax.xlane.f32.xlu2 %v115_v41 }
 0x327   :  { %241 = vrot.lane.b32.xlu1 %v976_v19, %s897_s1 }
 0x32c   :  { %186 = vrot.lane.b32.xlu2 %v976_v19, %s894_s28 }
 0x334   :  { %430 = vrot.lane.b32.xlu2 %v951_v5, %s898_s10 }
 0x381   :  { %v271_v48 = vpop.xlane.xlu1 %270 }
 0x382   :  { %v275_v49 = vsub.f32 %v239_v37, %v271_v48 }
 0x384   :  { %v277_v50 = vmul.f32 1.442695, %v275_v49 }
 0x387   :  { %v117_v42 = vpop.xlane.xlu2 %116 }
 0x388   :  { %v119_v43 = vsub.f32 %v110_v40, %v117_v42 }
 0x38a   :  { %v122_v44 = vmul.f32 1.442695, %v119_v43 }
 0x38c   :  { %866 = vpow2.f32 %v122_v44 }
 0x38d   :  { %868 = vpow2.f32 %v277_v50 }
 0x38f   :  { %v187_v45 = vpop.permute.xlu2 %186 }
 0x390   :  { %207 = vmatpush.msra.mxu3 %v187_v45 }
 0x392   :  { %v867_v46 = vpop.eup %866 }
 0x393   :  { %v127_v47 = vsel %vm60_vm1, %v867_v46, 0.0  ;;  %v869_v51 = vpop.eup %868 }
 0x394   :  { %128 = vadd.xlane.f32.xlu0 %v127_v47  ;;  %v281_v52 = vsel %vm60_vm1, %v869_v51, 0.0 }
 0x397   :  { %v431_v4 = vpop.permute.xlu2 %430 }
 0x399   :  { %v242_v2 = vpop.permute.xlu1 %241 }
 0x3a8   :  { %243 = vrot.lane.b32.xlu0 %v976_v19, %s896_s30 }
 0x3b0   :  { %317 = vrot.lane.b32.xlu0 %v951_v5, %s899_s11 }
 0x3da   :  { %282 = vadd.xlane.f32.xlu0 %v281_v52 }
 0x3ee   :  { %428 = vrot.lane.b32.xlu0 %v951_v5, %s900_s12 }
 0x407   :  { %v129_v53 = vpop.xlane.xlu0 %128 }
 0x408   :  { %870 = vrcp.f32 %v129_v53  ;;  %v155_v57 = vand.u32 2147483648, %v129_v53  ;;  %v153_v59 = vand.u32 2147483647, %v129_v53  ;;  %vm149_vm7 = vweird.f32 %v129_v53 }
 0x40a   :  { %v156_v61 = vor.u32 1.1754944e-38, %v155_v57  ;;  %vm154_vm9 = vcmp.eq.f32.partialorder %v153_v59, 8.507059e+37 }
 0x40e   :  { %v871_v54 = vpop.eup %870 }
 0x40f   :  { %v145_v55 = vmul.f32 %v871_v54, %v129_v53  ;;  %vm150_vm6 = vweird.f32 %v871_v54 }
 0x410   :  { %vm151_vm8 = vmor %vm149_vm7, %vm150_vm6 }
 0x411   :  { %v146_v56 = vsub.f32 1.0, %v145_v55 }
 0x413   :  { %v147_v58 = vmul.f32 %v871_v54, %v146_v56 }
 0x415   :  { %v148_v60 = vadd.f32 %v871_v54, %v147_v58 }
 0x417   :  { %v152_v62 = vsel %vm151_vm8, %v871_v54, %v148_v60 }
 0x418   :  { %v157_v63 = vsel %vm154_vm9, %v156_v61, %v152_v62 }
 0x419   :  { %v159_v0 = vmul.f32 %v867_v46, %v157_v63 }
 0x41a   :  { %v244_v1 = vpop.permute.xlu0 %243 }
 0x41b   :  { %823 = vmatmul.msk.f32.vlgmr.msra.gmra.mxu3 %vm60_vm1, %v159_v0  ;;  %826 = vmatpush.xpose.msk.msrb.mxu2 %vm60_vm1, %v244_v1 }
 0x41e   :  { %827 = vmatmul.msk.f32.vlgmr.msrb.gmra.mxu2 %vm60_vm1, %v242_v2 }
 0x41f   :  { %391 = vmatpush.msra.mxu2 %v369_v25 }
 0x422   :  { %v318_v3 = vpop.permute.xlu0 %317 }
 0x423   :  { %338 = vmatpush.msrb.mxu3 %v318_v3 }
 0x425   :  { %834 = vmatpush.xpose.msk.msra.mxu3 %vm60_vm1, %v431_v4 }
 0x44d   :  { %v283_v6 = vpop.xlane.xlu0 %282 }
 0x44e   :  { %872 = vrcp.f32 %v283_v6  ;;  %v298_v11 = vand.u32 2147483648, %v283_v6  ;;  %v296_v13 = vand.u32 2147483647, %v283_v6  ;;  %vm292_vm11 = vweird.f32 %v283_v6 }
 0x450   :  { %v299_v15 = vor.u32 1.1754944e-38, %v298_v11  ;;  %vm297_vm13 = vcmp.eq.f32.partialorder %v296_v13, 8.507059e+37 }
 0x454   :  { %v873_v7 = vpop.eup %872 }
 0x455   :  { %v288_v8 = vmul.f32 %v873_v7, %v283_v6  ;;  %vm293_vm10 = vweird.f32 %v873_v7 }
 0x456   :  { %vm294_vm12 = vmor %vm292_vm11, %vm293_vm10 }
 0x457   :  { %v289_v9 = vsub.f32 1.0, %v288_v8 }
 0x459   :  { %v290_v12 = vmul.f32 %v873_v7, %v289_v9  ;;  %v1043_v9 = vpop.f32.mrf.mxu0 }
 0x45b   :  { %v291_v14 = vadd.f32 %v873_v7, %v290_v12 }
 0x45d   :  { %v295_v16 = vsel %vm294_vm12, %v873_v7, %v291_v14 }
 0x45e   :  { %v300_v17 = vsel %vm297_vm13, %v299_v15, %v295_v16 }
 0x45f   :  { %v315_v18 = vmul.f32 %v869_v51, %v300_v17 }
 0x460   :  { %v429_v20 = vpop.permute.xlu0 %428 }
 0x461   :  { %828 = vmatmul.msk.f32.vlgmr.msrb.gmra.mxu3 %vm60_vm1, %v315_v18 }
 0x469   :  { %835 = vmatmul.msk.f32.vlgmr.msra.gmra.mxu3 %vm60_vm1, %v429_v20  ;;  %v584_v20 = vld [vmem:[%s1088_s2 + $0x10] sm:$0xff] }
 0x46a   :  { %606 = vmatpush.msrb.mxu2 %v584_v20 }
 0x49e   :  { %v209_v21 = vpop.f32.mrf.mxu3 }
 0x49f   :  { %833 = vmatmul.msk.f32.gmra.mxu0 %vm60_vm1, %v209_v21 }
 0x4a1   :  { %v266_v22 = vpop.f32.mrf.mxu2 }
 0x4a2   :  { %v267_v23 = vadd.f32 %v266_v22, %v971_v10 }
 0x4a4   :  { %v272_v24 = vsel %vm60_vm1, %v267_v23, -inf }
 0x4a5   :  { %273 = vmax.xlane.f32.xlu2 %v272_v24 }
 0x4bd   :  { %456 = vrot.lane.b32.xlu2 %v976_v19, %s900_s12 }
 0x4e4   :  { %v340_v26 = vpop.f32.mrf.mxu3 }
 0x4e5   :  { %830 = vmatmul.msk.f32.vlgmr.msra.gmra.mxu2 %vm60_vm1, %v340_v26 }
 0x4ec   :  { %v453_v27 = vpop.f32.mrf.mxu3 }
 0x4ed   :  { %v454_v28 = vadd.f32 %v453_v27, %v971_v10 }
 0x4ef   :  { %v484_v29 = vsel %vm60_vm1, %v454_v28, -inf }
 0x4f0   :  { %485 = vmax.xlane.f32.xlu1 %v484_v29 }
 0x509   :  { %343 = vrot.lane.b32.xlu1 %v976_v19, %s899_s11 }
 0x511   :  { %618 = vrot.lane.b32.xlu1 %v951_v5, %s901_s15 }
 0x518   :  { %v274_v30 = vpop.xlane.xlu2 %273 }
 0x519   :  { %v276_v31 = vsub.f32 %v267_v23, %v274_v30  ;;  %644 = vrot.lane.b32.xlu1 %v976_v19, %s902_s16 }
 0x51b   :  { %v279_v32 = vmul.f32 1.442695, %v276_v31 }
 0x51c   :  { %v1046_v12 = vpop.f32.mrf.mxu0 }
 0x51d   :  { %874 = vpow2.f32 %v279_v32 }
 0x520   :  { %v457_v55 = vpop.permute.xlu2 %456 }
 0x523   :  { %v875_v33 = vpop.eup %874 }
 0x524   :  { %v284_v34 = vsel %vm60_vm1, %v875_v33, 0.0 }
 0x525   :  { %285 = vadd.xlane.f32.xlu0 %v284_v34 }
 0x539   :  { %458 = vrot.lane.b32.xlu0 %v976_v19, %s898_s10 }
 0x541   :  { %532 = vrot.lane.b32.xlu0 %v951_v5, %s903_s17 }
 0x549   :  { %616 = vrot.lane.b32.xlu0 %v951_v5, %s902_s16 }
 0x563   :  { %v486_v35 = vpop.xlane.xlu1 %485 }
 0x564   :  { %v490_v36 = vsub.f32 %v454_v28, %v486_v35 }
 0x566   :  { %v492_v37 = vmul.f32 1.442695, %v490_v36 }
 0x568   :  { %876 = vpow2.f32 %v492_v37 }
 0x56e   :  { %v877_v38 = vpop.eup %876 }
 0x56f   :  { %v496_v39 = vsel %vm60_vm1, %v877_v38, 0.0 }
 0x570   :  { %497 = vadd.xlane.f32.xlu2 %v496_v39 }
 0x57b   :  { %v344_v40 = vpop.permute.xlu1 %343 }
 0x57c   :  { %364 = vmatpush.msrb.mxu1 %v344_v40 }
 0x583   :  { %v619_v41 = vpop.permute.xlu1 %618 }
 0x584   :  { %842 = vmatpush.xpose.msk.msra.mxu0 %vm60_vm1, %v619_v41 }
 0x588   :  { %646 = vrot.lane.b32.xlu2 %v976_v19, %s901_s15 }
 0x58b   :  { %v645_v8 = vpop.permute.xlu1 %644 }
 0x598   :  { %v286_v42 = vpop.xlane.xlu0 %285 }
 0x599   :  { %878 = vrcp.f32 %v286_v42  ;;  %v312_v46 = vand.u32 2147483648, %v286_v42  ;;  %v310_v48 = vand.u32 2147483647, %v286_v42  ;;  %vm306_vm15 = vweird.f32 %v286_v42 }
 0x59b   :  { %v313_v50 = vor.u32 1.1754944e-38, %v312_v46  ;;  %vm311_vm2 = vcmp.eq.f32.partialorder %v310_v48, 8.507059e+37 }
 0x59f   :  { %v879_v43 = vpop.eup %878 }
 0x5a0   :  { %v302_v44 = vmul.f32 %v879_v43, %v286_v42  ;;  %vm307_vm14 = vweird.f32 %v879_v43 }
 0x5a1   :  { %vm308_vm0 = vmor %vm306_vm15, %vm307_vm14 }
 0x5a2   :  { %v303_v45 = vsub.f32 1.0, %v302_v44 }
 0x5a4   :  { %v304_v47 = vmul.f32 %v879_v43, %v303_v45 }
 0x5a6   :  { %v305_v49 = vadd.f32 %v879_v43, %v304_v47 }
 0x5a8   :  { %v309_v51 = vsel %vm308_vm0, %v879_v43, %v305_v49 }
 0x5a9   :  { %v314_v52 = vsel %vm311_vm2, %v313_v50, %v309_v51 }
 0x5aa   :  { %v316_v53 = vmul.f32 %v875_v33, %v314_v52 }
 0x5ab   :  { %v459_v54 = vpop.permute.xlu0 %458 }
 0x5ac   :  { %829 = vmatmul.msk.f32.vlgmr.msrb.gmra.mxu1 %vm60_vm1, %v316_v53 }
 0x5ad   :  { %836 = vmatpush.xpose.msk.msra.mxu1 %vm60_vm1, %v459_v54 }
 0x5b3   :  { %v533_v56 = vpop.permute.xlu0 %532 }
 0x5b4   :  { %837 = vmatmul.msk.f32.vlgmr.msra.gmra.mxu1 %vm60_vm1, %v457_v55  ;;  %553 = vmatpush.msrb.mxu3 %v533_v56 }
 0x5bb   :  { %v617_v57 = vpop.permute.xlu0 %616 }
 0x5bc   :  { %843 = vmatmul.msk.f32.vlgmr.msra.gmra.mxu0 %vm60_vm1, %v617_v57 }
 0x5e3   :  { %v498_v58 = vpop.xlane.xlu2 %497 }
 0x5e4   :  { %880 = vrcp.f32 %v498_v58  ;;  %v513_v63 = vand.u32 2147483648, %v498_v58  ;;  %v511_v1 = vand.u32 2147483647, %v498_v58  ;;  %vm507_vm4 = vweird.f32 %v498_v58 }
 0x5e6   :  { %v514_v3 = vor.u32 1.1754944e-38, %v513_v63  ;;  %vm512_vm6 = vcmp.eq.f32.partialorder %v511_v1, 8.507059e+37 }
 0x5ea   :  { %v881_v59 = vpop.eup %880 }
 0x5eb   :  { %v503_v60 = vmul.f32 %v881_v59, %v498_v58  ;;  %v647_v61 = vpop.permute.xlu2 %646  ;;  %vm508_vm3 = vweird.f32 %v881_v59 }
 0x5ec   :  { %844 = vmatpush.xpose.msk.msra.mxu3 %vm60_vm1, %v647_v61  ;;  %vm509_vm5 = vmor %vm507_vm4, %vm508_vm3 }
 0x5ed   :  { %v504_v62 = vsub.f32 1.0, %v503_v60 }
 0x5ef   :  { %v505_v0 = vmul.f32 %v881_v59, %v504_v62 }
 0x5f1   :  { %v506_v2 = vadd.f32 %v881_v59, %v505_v0 }
 0x5f3   :  { %v510_v4 = vsel %vm509_vm5, %v881_v59, %v506_v2 }
 0x5f4   :  { %v515_v6 = vsel %vm512_vm6, %v514_v3, %v510_v4 }
 0x5f5   :  { %v530_v7 = vmul.f32 %v877_v38, %v515_v6 }
 0x5f7   :  { %838 = vmatmul.msk.f32.vlgmr.msrb.gmra.mxu3 %vm60_vm1, %v530_v7 }
 0x5ff   :  { %845 = vmatmul.msk.f32.vlgmr.msra.gmra.mxu3 %vm60_vm1, %v645_v8 }
 0x629   :  { %v366_v11 = vpop.f32.mrf.mxu1 }
 0x62a   :  { %831 = vmatmul.msk.f32.gmra.mxu2 %vm60_vm1, %v366_v11 }
 0x631   :  { %v481_v13 = vpop.f32.mrf.mxu1 }
 0x632   :  { %v482_v14 = vadd.f32 %v481_v13, %v971_v10 }
 0x634   :  { %v487_v15 = vsel %vm60_vm1, %v482_v14, -inf }
 0x635   :  { %488 = vmax.xlane.f32.xlu2 %v487_v15 }
 0x639   :  { %v641_v16 = vpop.f32.mrf.mxu0 }
 0x63a   :  { %v642_v17 = vadd.f32 %v641_v16, %v971_v10  ;;  %v772_v16 = vld [vmem:[%s1088_s2 + $0x18] sm:$0xff] }
 0x63b   :  { %794 = vmatpush.msrb.mxu3 %v772_v16 }
 0x63c   :  { %v672_v18 = vsel %vm60_vm1, %v642_v17, -inf }
 0x63d   :  { %673 = vmax.xlane.f32.xlu0 %v672_v18 }
 0x67a   :  { %v555_v21 = vpop.f32.mrf.mxu3 }
 0x67b   :  { %840 = vmatmul.msk.f32.vlgmr.msrb.gmra.mxu2 %vm60_vm1, %v555_v21  ;;  %v393_v21 = vpop.f32.mrf.mxu2 }
 0x682   :  { %v669_v22 = vpop.f32.mrf.mxu3 }
 0x683   :  { %v670_v23 = vadd.f32 %v669_v22, %v971_v10 }
 0x685   :  { %v675_v24 = vsel %vm60_vm1, %v670_v23, -inf }
 0x686   :  { %676 = vmax.xlane.f32.xlu1 %v675_v24  ;;  %v423_v24 = vadd.f32 %v1043_v9, %v393_v21 }
 0x6a8   :  { %v489_v25 = vpop.xlane.xlu2 %488 }
 0x6a9   :  { %v491_v26 = vsub.f32 %v482_v14, %v489_v25 }
 0x6ab   :  { %v494_v27 = vmul.f32 1.442695, %v491_v26  ;;  %v861_v26 = vld [vmem:[%s1089_s3] ss:$0 sm:$0xff] }
 0x6ad   :  { %882 = vpow2.f32 %v494_v27  ;;  %v396_v22 = vpop.f32.mrf.mxu2 }
 0x6b0   :  { %v674_v28 = vpop.xlane.xlu0 %673 }
 0x6b1   :  { %v678_v29 = vsub.f32 %v642_v17, %v674_v28 }
 0x6b3   :  { %v883_v30 = vpop.eup %882  ;;  %v680_v31 = vmul.f32 1.442695, %v678_v29 }
 0x6b4   :  { %v499_v32 = vsel %vm60_vm1, %v883_v30, 0.0 }
 0x6b5   :  { %884 = vpow2.f32 %v680_v31  ;;  %500 = vadd.xlane.f32.xlu2 %v499_v32  ;;  %v426_v31 = vadd.f32 %v1046_v12, %v396_v22 }
 0x6bb   :  { %v885_v33 = vpop.eup %884 }
 0x6bc   :  { %v684_v34 = vsel %vm60_vm1, %v885_v33, 0.0 }
 0x6bd   :  { %685 = vadd.xlane.f32.xlu0 %v684_v34 }
 0x6cd   :  { %558 = vrot.lane.b32.xlu2 %v976_v19, %s903_s17 }
 0x6d1   :  { %720 = vrot.lane.b32.xlu0 %v951_v5, %s904_s20 }
 0x6f9   :  { %v677_v10 = vpop.xlane.xlu1 %676 }
 0x6fa   :  { %v679_v35 = vsub.f32 %v670_v23, %v677_v10 }
 0x6fc   :  { %v682_v36 = vmul.f32 1.442695, %v679_v35 }
 0x6fe   :  { %886 = vpow2.f32 %v682_v36  ;;  %v608_v23 = vpop.f32.mrf.mxu2 }
 0x6ff   :  { %v614_v25 = vadd.f32 %v608_v23, %v423_v24 }
 0x704   :  { %v887_v37 = vpop.eup %886 }
 0x705   :  { %v687_v38 = vsel %vm60_vm1, %v887_v37, 0.0 }
 0x706   :  { %688 = vadd.xlane.f32.xlu1 %v687_v38 }
 0x71f   :  { %746 = vrot.lane.b32.xlu1 %v976_v19, %s904_s20 }
 0x728   :  { %v501_v39 = vpop.xlane.xlu2 %500 }
 0x729   :  { %888 = vrcp.f32 %v501_v39  ;;  %v527_v5 = vand.u32 2147483648, %v501_v39  ;;  %v525_v46 = vand.u32 2147483647, %v501_v39  ;;  %vm521_vm8 = vweird.f32 %v501_v39 }
 0x72b   :  { %v528_v49 = vor.u32 1.1754944e-38, %v527_v5  ;;  %vm526_vm10 = vcmp.eq.f32.partialorder %v525_v46, 8.507059e+37 }
 0x72f   :  { %v889_v40 = vpop.eup %888 }
 0x730   :  { %v517_v41 = vmul.f32 %v889_v40, %v501_v39  ;;  %v559_v42 = vpop.permute.xlu2 %558  ;;  %v686_v43 = vpop.xlane.xlu0 %685  ;;  %vm522_vm7 = vweird.f32 %v889_v40 }
 0x731   :  { %890 = vrcp.f32 %v686_v43  ;;  %579 = vmatpush.msrb.mxu1 %v559_v42  ;;  %vm523_vm9 = vmor %vm521_vm8, %vm522_vm7  ;;  %v701_v54 = vand.u32 2147483648, %v686_v43  ;;  %v699_v56 = vand.u32 2147483647, %v686_v43  ;;  %vm695_vm12 = vweird.f32 %v686_v43 }
 0x732   :  { %v518_v44 = vsub.f32 1.0, %v517_v41 }
 0x733   :  { %v702_v58 = vor.u32 1.1754944e-38, %v701_v54  ;;  %vm700_vm14 = vcmp.eq.f32.partialorder %v699_v56, 8.507059e+37 }
 0x734   :  { %v519_v45 = vmul.f32 %v889_v40, %v518_v44 }
 0x736   :  { %v520_v47 = vadd.f32 %v889_v40, %v519_v45 }
 0x737   :  { %v891_v48 = vpop.eup %890 }
 0x738   :  { %v524_v50 = vsel %vm523_vm9, %v889_v40, %v520_v47  ;;  %v691_v19 = vmul.f32 %v891_v48, %v686_v43  ;;  %vm696_vm11 = vweird.f32 %v891_v48 }
 0x739   :  { %v529_v51 = vsel %vm526_vm10, %v528_v49, %v524_v50  ;;  %vm697_vm13 = vmor %vm695_vm12, %vm696_vm11 }
 0x73a   :  { %v692_v52 = vsub.f32 1.0, %v691_v19  ;;  %v531_v53 = vmul.f32 %v883_v30, %v529_v51 }
 0x73c   :  { %v693_v55 = vmul.f32 %v891_v48, %v692_v52  ;;  %839 = vmatmul.msk.f32.vlgmr.msrb.gmra.mxu1 %vm60_vm1, %v531_v53 }
 0x73e   :  { %v694_v57 = vadd.f32 %v891_v48, %v693_v55 }
 0x740   :  { %v698_v59 = vsel %vm697_vm13, %v891_v48, %v694_v57 }
 0x741   :  { %v703_v60 = vsel %vm700_vm14, %v702_v58, %v698_v59 }
 0x742   :  { %v718_v61 = vmul.f32 %v885_v33, %v703_v60 }
 0x743   :  { %v721_v62 = vpop.permute.xlu0 %720 }
 0x744   :  { %741 = vmatpush.msra.mxu1 %v721_v62 }
 0x745   :  { %846 = vmatmul.msk.f32.vlgmr.msra.gmra.mxu1 %vm60_vm1, %v718_v61 }
 0x779   :  { %v689_v63 = vpop.xlane.xlu1 %688 }
 0x77a   :  { %892 = vrcp.f32 %v689_v63  ;;  %v715_v6 = vand.u32 2147483648, %v689_v63  ;;  %vm709_vm0 = vweird.f32 %v689_v63  ;;  %v713_v7 = vand.u32 2147483647, %v689_v63 }
 0x77c   :  { %v716_v11 = vor.u32 1.1754944e-38, %v715_v6  ;;  %vm714_vm3 = vcmp.eq.f32.partialorder %v713_v7, 8.507059e+37 }
 0x780   :  { %v893_v0 = vpop.eup %892 }
 0x781   :  { %v705_v1 = vmul.f32 %v893_v0, %v689_v63  ;;  %vm710_vm15 = vweird.f32 %v893_v0 }
 0x782   :  { %vm711_vm2 = vmor %vm709_vm0, %vm710_vm15 }
 0x783   :  { %v706_v2 = vsub.f32 1.0, %v705_v1 }
 0x785   :  { %v707_v3 = vmul.f32 %v893_v0, %v706_v2 }
 0x787   :  { %v708_v4 = vadd.f32 %v893_v0, %v707_v3 }
 0x789   :  { %v712_v8 = vsel %vm711_vm2, %v893_v0, %v708_v4 }
 0x78a   :  { %v717_v13 = vsel %vm714_vm3, %v716_v11, %v712_v8 }
 0x78b   :  { %v719_v15 = vmul.f32 %v887_v37, %v717_v13 }
 0x791   :  { %v747_v14 = vpop.permute.xlu1 %746 }
 0x792   :  { %767 = vmatpush.msrb.mxu0 %v747_v14 }
 0x793   :  { %847 = vmatmul.msk.f32.vlgmr.msrb.gmra.mxu0 %vm60_vm1, %v719_v15 }
 0x7b9   :  { %v581_v17 = vpop.f32.mrf.mxu1 }
 0x7ba   :  { %841 = vmatmul.msk.f32.gmra.mxu2 %vm60_vm1, %v581_v17 }
 0x7c2   :  { %v743_v18 = vpop.f32.mrf.mxu1 }
 0x7c3   :  { %848 = vmatmul.msk.f32.vlgmr.msrb.gmra.mxu3 %vm60_vm1, %v743_v18 }
 0x810   :  { %v769_v20 = vpop.f32.mrf.mxu0 }
 0x811   :  { %849 = vmatmul.msk.f32.gmra.mxu3 %vm60_vm1, %v769_v20 }
 0x83d   :  { %v611_v30 = vpop.f32.mrf.mxu2 }
 0x83e   :  { %v615_v32 = vadd.f32 %v611_v30, %v426_v31 }
 0x846   :  { %v796_v27 = vpop.f32.mrf.mxu3 }
 0x847   :  { %v802_v28 = vadd.f32 %v796_v27, %v614_v25 }
 0x849   :  { %v808_v29 = vadd.f32 %v861_v26, %v802_v28 }
 0x84b   :  { %810 = vst [vmem:[%s1090_s5] sm:$0xff] %v808_v29 }
 0x894   :  { %v799_v33 = vpop.f32.mrf.mxu3 }
 0x895   :  { %v803_v34 = vadd.f32 %v799_v33, %v615_v32 }
 0x897   :  { %v809_v10 = vadd.f32 %v861_v26, %v803_v34 }
 0x899   :  { %811 = vst [vmem:[%s1090_s5 + $0x8] sm:$0xff] %v809_v10 }

</bundles_post_ra>
